<compile_context>
chip_gen: v7x
topology: tpu7x:2x2x1
jax: 0.10.0
libtpu: 0.0.40
codegen_flags: <defaults>
</compile_context>

<pallas_src>
import jax
import jax.numpy as jnp
from jax.experimental import pallas as pl
from jax.experimental.pallas import tpu as pltpu


# ----------------------------- in-kernel helpers -----------------------------

def _erf_approx(x):
    """erf(x) via Abramowitz & Stegun 7.1.26 (max abs error ~1.5e-7), fp32."""
    a1 = 0.254829592
    a2 = -0.284496736
    a3 = 1.421413741
    a4 = -1.453152027
    a5 = 1.061405429
    p = 0.3275911
    ax = jnp.abs(x)
    t = pl.reciprocal(1.0 + p * ax, approx=False)   # divide -> EUP slot
    poly = ((((a5 * t + a4) * t + a3) * t + a2) * t + a1) * t
    y = 1.0 - poly * jnp.exp(-ax * ax)
    return jnp.where(x >= 0.0, y, -y)


def _gelu_exact(x):
    """Exact (erf-based) GELU, matching torch.nn.GELU() default."""
    return 0.5 * x * (1.0 + _erf_approx(x * 0.7071067811865475))


# --------------------------------- kernels ------------------------------------

def _ffn_resident_kernel(x_ref, w1_ref, b1_ref, w2_ref, b2_ref, o_ref):
    # grid = (i over M row tiles).  Weights are full-extent & VMEM-resident.
    # x: (tm, dim)  w1: (dim, hidden)  b1: (1, hidden)  w2: (hidden, dim)  b2: (1, dim)
    h = jnp.dot(x_ref[...], w1_ref[...], preferred_element_type=jnp.float32)
    h = h + b1_ref[...].astype(jnp.float32)
    h = _gelu_exact(h)
    out = jnp.dot(h.astype(w2_ref.dtype), w2_ref[...],
                  preferred_element_type=jnp.float32)
    o_ref[...] = (out + b2_ref[...].astype(jnp.float32)).astype(o_ref.dtype)


def _ffn_streamed_kernel_f32out(x_ref, w1_ref, b1_ref, w2_ref, b2_ref, o_ref):
    # grid = (i over M row tiles [parallel], j over hidden slabs [reduction]).
    # fp32 output block is resident across j -> accumulate directly into it.
    j = pl.program_id(1)

    @pl.when(j == 0)
    def _():
        o_ref[...] = jnp.zeros_like(o_ref)

    h = jnp.dot(x_ref[...], w1_ref[...], preferred_element_type=jnp.float32)
    h = h + b1_ref[...].astype(jnp.float32)
    h = _gelu_exact(h)
    o_ref[...] += jnp.dot(h.astype(w2_ref.dtype), w2_ref[...],
                          preferred_element_type=jnp.float32)

    @pl.when(j == pl.num_programs(1) - 1)
    def _():
        o_ref[...] += b2_ref[...].astype(jnp.float32)


def _ffn_streamed_kernel_acc(x_ref, w1_ref, b1_ref, w2_ref, b2_ref, o_ref, acc_ref):
    # Same as above but with an fp32 VMEM accumulator for low-precision outputs.
    j = pl.program_id(1)

    @pl.when(j == 0)
    def _():
        acc_ref[...] = jnp.zeros_like(acc_ref)

    h = jnp.dot(x_ref[...], w1_ref[...], preferred_element_type=jnp.float32)
    h = h + b1_ref[...].astype(jnp.float32)
    h = _gelu_exact(h)
    acc_ref[...] += jnp.dot(h.astype(w2_ref.dtype), w2_ref[...],
                            preferred_element_type=jnp.float32)

    @pl.when(j == pl.num_programs(1) - 1)
    def _():
        o_ref[...] = (acc_ref[...] + b2_ref[...].astype(jnp.float32)).astype(o_ref.dtype)


# ------------------------------ JAX wrapper -----------------------------------

def _round_up(x, m):
    return (x + m - 1) // m * m


def _pick_hidden_tile(hidden):
    # Streamed path only.  Prefer large MXU-friendly multiples of 128 (fewer
    # reduction steps, better DMA/compute overlap), else the full hidden dim.
    for th in (1024, 512, 256, 128):
        if hidden % th == 0:
            return th
    return hidden


def _pick_row_tile(m, tm_target):
    tm = _round_up(min(tm_target, _round_up(m, 8)), 8)
    # Keep >=2 row tiles when M allows it so the "parallel" M axis can be split
    # across v7x's two TensorCores (no effect on single-TC v5e/v6e).
    if m > 8 and _round_up(m, tm) // tm < 2:
        tm = _round_up((m + 1) // 2, 8)
    return tm


def feedforward_forward(params, x, *, tm_target=256, hidden_tile=None,
                        compute_dtype=None, force_streamed=False,
                        resident_weight_budget=24 * 1024 * 1024):
    """Pallas equivalent of FeedForward.forward(x) for x of shape (..., dim).

    compute_dtype: optionally cast x/W1/W2 to (e.g.) jnp.bfloat16 for the matmuls
    (fp32 accumulation).  Default None keeps the exact fp32 path.
    """
    *lead, dim = x.shape
    m = 1
    for s in lead:
        m *= s
    out_dtype = x.dtype
    x2d = x.reshape(m, dim)

    w1, w2 = params["w1"], params["w2"]
    b1 = params["b1"].reshape(1, -1)
    b2 = params["b2"].reshape(1, dim)
    hidden = w1.shape[1]

    if compute_dtype is not None:
        # bf16 matmuls with fp32 accumulation (production dtype flag; see notes).
        w1 = w1.astype(compute_dtype)
        w2 = w2.astype(compute_dtype)
        x2d = x2d.astype(compute_dtype)

    x_item = x2d.dtype.itemsize
    o_item = jnp.zeros((), out_dtype).dtype.itemsize
    w_item = w1.dtype.itemsize
    weight_bytes = (w1.size + w2.size) * w_item + (b1.size + b2.size) * b1.dtype.itemsize

    use_resident = (not force_streamed) and (weight_bytes <= resident_weight_budget)

    if use_resident:
        tm = _pick_row_tile(m, tm_target)
    else:
        # Streamed slabs need a large row tile to amortize re-fetched weights.
        tm = _pick_row_tile(m, max(tm_target, 512))

    m_pad = _round_up(m, tm)
    if m_pad != m:
        x2d = jnp.pad(x2d, ((0, m_pad - m), (0, 0)))

    if use_resident:
        # ---------- resident-weights fast path: grid = (row tiles,) ----------
        grid = (m_pad // tm,)
        vmem_bytes = (weight_bytes
                      + 2 * tm * dim * x_item            # double-buffered x blocks
                      + 2 * tm * dim * o_item            # double-buffered out blocks
                      + tm * hidden * 4                  # fp32 hidden activation
                      + tm * hidden * w_item)            # cast copy for 2nd matmul
        vmem_limit = min(max(int(vmem_bytes * 1.5) + (2 << 20), 16 << 20), 100 << 20)

        cost = pl.CostEstimate(
            flops=4 * m_pad * dim * hidden,
            transcendentals=m_pad * hidden,
            bytes_accessed=(m_pad * dim * (x_item + o_item) + weight_bytes),
        )

        out = pl.pallas_call(
            _ffn_resident_kernel,
            out_shape=jax.ShapeDtypeStruct((m_pad, dim), out_dtype),
            grid_spec=pltpu.PrefetchScalarGridSpec(
                num_scalar_prefetch=0,
                grid=grid,
                in_specs=[
                    pl.BlockSpec((tm, dim), lambda i: (i, 0)),        # x row block
                    pl.BlockSpec((dim, hidden), lambda i: (0, 0)),    # W1 (resident)
                    pl.BlockSpec((1, hidden), lambda i: (0, 0)),      # b1 (resident)
                    pl.BlockSpec((hidden, dim), lambda i: (0, 0)),    # W2 (resident)
                    pl.BlockSpec((1, dim), lambda i: (0, 0)),         # b2 (resident)
                ],
                out_specs=pl.BlockSpec((tm, dim), lambda i: (i, 0)),
            ),
            compiler_params=pltpu.CompilerParams(
                dimension_semantics=("parallel",),
                vmem_limit_bytes=vmem_limit,
            ),
            cost_estimate=cost,
        )(x2d, w1, b1, w2, b2)
    else:
        # ---------- streamed-weights fallback: grid = (row tiles, hidden slabs) ----
        th = hidden_tile if hidden_tile is not None else _pick_hidden_tile(hidden)
        assert hidden % th == 0
        grid = (m_pad // tm, hidden // th)

        f32_out = out_dtype == jnp.float32
        kernel = _ffn_streamed_kernel_f32out if f32_out else _ffn_streamed_kernel_acc
        scratch = [] if f32_out else [pltpu.VMEM((tm, dim), jnp.float32)]

        vmem_bytes = (2 * tm * dim * x_item + 2 * tm * dim * o_item
                      + 2 * dim * th * w_item + 2 * th * dim * w_item
                      + 2 * th * b1.dtype.itemsize + dim * b2.dtype.itemsize
                      + tm * th * 4 + tm * th * w_item
                      + (0 if f32_out else tm * dim * 4))
        vmem_limit = min(max(int(vmem_bytes * 1.5) + (2 << 20), 16 << 20), 100 << 20)

        n_row_tiles = m_pad // tm
        cost = pl.CostEstimate(
            flops=4 * m_pad * dim * hidden,
            transcendentals=m_pad * hidden,
            bytes_accessed=(m_pad * dim * (x_item + o_item)
                            + n_row_tiles * weight_bytes),   # weights re-streamed per row tile
        )

        out = pl.pallas_call(
            kernel,
            out_shape=jax.ShapeDtypeStruct((m_pad, dim), out_dtype),
            grid_spec=pltpu.PrefetchScalarGridSpec(
                num_scalar_prefetch=0,
                grid=grid,
                in_specs=[
                    pl.BlockSpec((tm, dim), lambda i, j: (i, 0)),   # x row block (resident over j)
                    pl.BlockSpec((dim, th), lambda i, j: (0, j)),   # W1 column slab
                    pl.BlockSpec((1, th), lambda i, j: (0, j)),     # b1 slab
                    pl.BlockSpec((th, dim), lambda i, j: (j, 0)),   # W2 row slab
                    pl.BlockSpec((1, dim), lambda i, j: (0, 0)),    # b2 (resident)
                ],
                out_specs=pl.BlockSpec((tm, dim), lambda i, j: (i, 0)),
                scratch_shapes=scratch,
            ),
            compiler_params=pltpu.CompilerParams(
                dimension_semantics=("parallel", "arbitrary"),
                vmem_limit_bytes=vmem_limit,
            ),
            cost_estimate=cost,
        )(x2d, w1, b1, w2, b2)

    if m_pad != m:
        out = out[:m]
    return out.reshape(*lead, dim)


def init_params(key, dim, hidden_dim, dtype=jnp.float32):
    # PyTorch nn.Linear stores weight as (out, in); we store (in, out) for x @ W.
    k1, k2, k3, k4 = jax.random.split(key, 4)
    return {
        "w1": jax.random.normal(k1, (dim, hidden_dim), dtype) * 0.02,
        "b1": jax.random.normal(k2, (hidden_dim,), dtype) * 0.02,
        "w2": jax.random.normal(k3, (hidden_dim, dim), dtype) * 0.02,
        "b2": jax.random.normal(k4, (dim,), dtype) * 0.02,
    }


# --------------------------- reference (plain JAX) ----------------------------

def feedforward_reference(params, x):
    h = x @ params["w1"] + params["b1"]
    h = jax.nn.gelu(h, approximate=False)        # exact erf GELU == nn.GELU() default
    return h @ params["w2"] + params["b2"]       # Dropout(p=0.0) is identity


# ----------------------------------- main --------------------------------------

if __name__ == "__main__":
    # Small shapes consistent with the module: batch=2, seq=8, dim=32, hidden=256.
    B, N, DIM, HIDDEN = 2, 8, 32, 256

    key = jax.random.PRNGKey(0)
    kp, kx = jax.random.split(key)

    params = init_params(kp, DIM, HIDDEN)
    x = jax.random.normal(kx, (B, N, DIM), jnp.float32)
    ref = feedforward_reference(params, x)

    # Primary resident-weights path: weights DMA'd once and kept in VMEM,
    # grid = (2,) row tiles -> exercises the parallel M axis even at toy sizes.
    out = feedforward_forward(params, x, tm_target=8)
    out = jax.block_until_ready(out)
    assert out.shape == (B, N, DIM)
    assert jnp.allclose(out, ref, atol=1e-4, rtol=1e-4), "resident path mismatch vs JAX reference"

    # Streamed-slab fallback (used for weights too large for VMEM): grid (2, 2)
    # exercises the hidden-reduction accumulation directly into the fp32 output block.
    out_s = feedforward_forward(params, x, tm_target=8, hidden_tile=128, force_streamed=True)
    out_s = jax.block_until_ready(out_s)
    assert jnp.allclose(out_s, ref, atol=1e-4, rtol=1e-4), "streamed path mismatch vs JAX reference"

    # TODO(synk): Dropout with p > 0 (training-mode RNG masking) is not implemented;
    # the module's default p = 0.0 makes it an identity in this forward pass.

    print("KERNEL_OK")
</pallas_src>

<mosaic_0001>
module attributes {stable_mosaic.version = 11 : i64} {
  func.func @_ffn_resident_kernel(%arg0: i32, %arg1: memref<8x32xf32, #tpu.memory_space<vmem>>, %arg2: memref<32x256xf32, #tpu.memory_space<vmem>>, %arg3: memref<1x256xf32, #tpu.memory_space<vmem>>, %arg4: memref<256x32xf32, #tpu.memory_space<vmem>>, %arg5: memref<1x32xf32, #tpu.memory_space<vmem>>, %arg6: memref<8x32xf32, #tpu.memory_space<vmem>>) attributes {dimension_semantics = [#tpu.dimension_semantics<parallel>], iteration_bounds = array<i64: 2>, scalar_prefetch = 0 : i64, scratch_operands = 0 : i64, tpu.core_type = #tpu.core_type<tc>, window_params = [{transform_indices = @transform_0, window_bounds = array<i64: 8, 32>}, {pipeline_mode = #tpu.pipeline_mode<synchronous>, transform_indices = @transform_1, window_bounds = array<i64: 32, 256>}, {pipeline_mode = #tpu.pipeline_mode<synchronous>, transform_indices = @transform_2, window_bounds = array<i64: 1, 256>}, {pipeline_mode = #tpu.pipeline_mode<synchronous>, transform_indices = @transform_3, window_bounds = array<i64: 256, 32>}, {pipeline_mode = #tpu.pipeline_mode<synchronous>, transform_indices = @transform_4, window_bounds = array<i64: 1, 32>}, {transform_indices = @transform_5, window_bounds = array<i64: 8, 32>}]} {
    %c0 = arith.constant 0 : index
    %c0_0 = arith.constant 0 : index
    %0 = vector.load %arg1[%c0, %c0_0] : memref<8x32xf32, #tpu.memory_space<vmem>>, vector<8x32xf32>
    %c0_1 = arith.constant 0 : index
    %c0_2 = arith.constant 0 : index
    %1 = vector.load %arg2[%c0_1, %c0_2] : memref<32x256xf32, #tpu.memory_space<vmem>>, vector<32x256xf32>
    %cst = arith.constant dense<0.000000e+00> : vector<8x256xf32>
    %2 = tpu.matmul %0, %1, %cst {dimension_numbers = #tpu.dot_dimension_numbers<[1], [0], [0], [1], [0, 0, 1, 1], [], []>} : vector<8x32xf32>, vector<32x256xf32>, vector<8x256xf32> -> vector<8x256xf32>
    %c0_3 = arith.constant 0 : index
    %c0_4 = arith.constant 0 : index
    %3 = vector.load %arg3[%c0_3, %c0_4] : memref<1x256xf32, #tpu.memory_space<vmem>>, vector<1x256xf32>
    %4 = vector.broadcast %3 : vector<1x256xf32> to vector<8x256xf32>
    %5 = arith.addf %2, %4 : vector<8x256xf32>
    %cst_5 = arith.constant 5.000000e-01 : f32
    %6 = vector.broadcast %cst_5 : f32 to vector<8x256xf32>
    %7 = arith.mulf %6, %5 : vector<8x256xf32>
    %cst_6 = arith.constant 0.707106769 : f32
    %8 = vector.broadcast %cst_6 : f32 to vector<8x256xf32>
    %9 = arith.mulf %5, %8 : vector<8x256xf32>
    %10 = math.absf %9 : vector<8x256xf32>
    %cst_7 = arith.constant 0.327591091 : f32
    %11 = vector.broadcast %cst_7 : f32 to vector<8x256xf32>
    %12 = arith.mulf %11, %10 : vector<8x256xf32>
    %cst_8 = arith.constant 1.000000e+00 : f32
    %13 = vector.broadcast %cst_8 : f32 to vector<8x256xf32>
    %14 = arith.addf %13, %12 : vector<8x256xf32>
    %15 = tpu.reciprocal %14 : vector<8x256xf32> -> vector<8x256xf32>
    %cst_9 = arith.constant 1.06140542 : f32
    %16 = vector.broadcast %cst_9 : f32 to vector<8x256xf32>
    %17 = arith.mulf %16, %15 : vector<8x256xf32>
    %cst_10 = arith.constant -1.45315206 : f32
    %18 = vector.broadcast %cst_10 : f32 to vector<8x256xf32>
    %19 = arith.addf %17, %18 : vector<8x256xf32>
    %20 = arith.mulf %19, %15 : vector<8x256xf32>
    %cst_11 = arith.constant 1.42141378 : f32
    %21 = vector.broadcast %cst_11 : f32 to vector<8x256xf32>
    %22 = arith.addf %20, %21 : vector<8x256xf32>
    %23 = arith.mulf %22, %15 : vector<8x256xf32>
    %cst_12 = arith.constant -0.284496725 : f32
    %24 = vector.broadcast %cst_12 : f32 to vector<8x256xf32>
    %25 = arith.addf %23, %24 : vector<8x256xf32>
    %26 = arith.mulf %25, %15 : vector<8x256xf32>
    %cst_13 = arith.constant 0.254829586 : f32
    %27 = vector.broadcast %cst_13 : f32 to vector<8x256xf32>
    %28 = arith.addf %26, %27 : vector<8x256xf32>
    %29 = arith.mulf %28, %15 : vector<8x256xf32>
    %cst_14 = arith.constant 0.000000e+00 : f32
    %30 = vector.broadcast %cst_14 : f32 to vector<8x256xf32>
    %31 = arith.subf %30, %10 : vector<8x256xf32>
    %32 = arith.mulf %31, %10 : vector<8x256xf32>
    %33 = math.exp %32 : vector<8x256xf32>
    %34 = arith.mulf %29, %33 : vector<8x256xf32>
    %cst_15 = arith.constant 1.000000e+00 : f32
    %35 = vector.broadcast %cst_15 : f32 to vector<8x256xf32>
    %36 = arith.subf %35, %34 : vector<8x256xf32>
    %cst_16 = arith.constant 0.000000e+00 : f32
    %37 = vector.broadcast %cst_16 : f32 to vector<8x256xf32>
    %38 = arith.cmpf oge, %9, %37 : vector<8x256xf32>
    %cst_17 = arith.constant 0.000000e+00 : f32
    %39 = vector.broadcast %cst_17 : f32 to vector<8x256xf32>
    %40 = arith.subf %39, %36 : vector<8x256xf32>
    %41 = arith.select %38, %36, %40 : vector<8x256xi1>, vector<8x256xf32>
    %cst_18 = arith.constant 1.000000e+00 : f32
    %42 = vector.broadcast %cst_18 : f32 to vector<8x256xf32>
    %43 = arith.addf %42, %41 : vector<8x256xf32>
    %44 = arith.mulf %7, %43 : vector<8x256xf32>
    %c0_19 = arith.constant 0 : index
    %c0_20 = arith.constant 0 : index
    %45 = vector.load %arg4[%c0_19, %c0_20] : memref<256x32xf32, #tpu.memory_space<vmem>>, vector<256x32xf32>
    %cst_21 = arith.constant dense<0.000000e+00> : vector<8x32xf32>
    %46 = tpu.matmul %44, %45, %cst_21 {dimension_numbers = #tpu.dot_dimension_numbers<[1], [0], [0], [1], [0, 0, 1, 1], [], []>} : vector<8x256xf32>, vector<256x32xf32>, vector<8x32xf32> -> vector<8x32xf32>
    %c0_22 = arith.constant 0 : index
    %c0_23 = arith.constant 0 : index
    %47 = vector.load %arg5[%c0_22, %c0_23] : memref<1x32xf32, #tpu.memory_space<vmem>>, vector<1x32xf32>
    %48 = vector.broadcast %47 : vector<1x32xf32> to vector<8x32xf32>
    %49 = arith.addf %46, %48 : vector<8x32xf32>
    %c0_24 = arith.constant 0 : index
    %c0_25 = arith.constant 0 : index
    %50 = vector.load %arg6[%c0_24, %c0_25] : memref<8x32xf32, #tpu.memory_space<vmem>>, vector<8x32xf32>
    tpu.vector_store %arg6[%c0_24, %c0_25], %49 {strides = array<i32>} : memref<8x32xf32, #tpu.memory_space<vmem>>, vector<8x32xf32>,
    return
  }
  func.func @transform_0(%arg0: i32) -> (i32, i32) {
    %c0_i32 = arith.constant 0 : i32
    %c0_i32_0 = arith.constant 0 : i32
    return %arg0, %c0_i32 : i32, i32
  }
  func.func @transform_1(%arg0: i32) -> (i32, i32) {
    %c0_i32 = arith.constant 0 : i32
    %c0_i32_0 = arith.constant 0 : i32
    %c0_i32_1 = arith.constant 0 : i32
    return %c0_i32, %c0_i32_0 : i32, i32
  }
  func.func @transform_2(%arg0: i32) -> (i32, i32) {
    %c0_i32 = arith.constant 0 : i32
    %c0_i32_0 = arith.constant 0 : i32
    %c0_i32_1 = arith.constant 0 : i32
    return %c0_i32, %c0_i32_0 : i32, i32
  }
  func.func @transform_3(%arg0: i32) -> (i32, i32) {
    %c0_i32 = arith.constant 0 : i32
    %c0_i32_0 = arith.constant 0 : i32
    %c0_i32_1 = arith.constant 0 : i32
    return %c0_i32, %c0_i32_0 : i32, i32
  }
  func.func @transform_4(%arg0: i32) -> (i32, i32) {
    %c0_i32 = arith.constant 0 : i32
    %c0_i32_0 = arith.constant 0 : i32
    %c0_i32_1 = arith.constant 0 : i32
    return %c0_i32, %c0_i32_0 : i32, i32
  }
  func.func @transform_5(%arg0: i32) -> (i32, i32) {
    %c0_i32 = arith.constant 0 : i32
    %c0_i32_0 = arith.constant 0 : i32
    return %arg0, %c0_i32 : i32, i32
  }
}

</mosaic_0001>

<bundles_post_ra>
// kernel: tpu_custom_call.1
= control target key start
LH: loop header
LB: loop body
LE: loop exit
PB: predicated region body
PF: predicated region fallthrough
CT: control target
= control target key end

     0   :  { %10 = vsyncpa [#allocation3], 0  ;;  %s1010_s0 = inlined_call_operand.vmem [shape: f32[16,32], index: 0, kind: input, shape index: {}]   ;;  %s1011_s1 = inlined_call_operand.vmem [shape: f32[32,256], index: 1, kind: input, shape index: {}]   ;;  %s1012_s2 = inlined_call_operand.vmem [shape: f32[1,256], index: 2, kind: input, shape index: {}]   ;;  %s1013_s3 = inlined_call_operand.vmem [shape: f32[256,32], index: 3, kind: input, shape index: {}]   ;;  %s1014_s4 = inlined_call_operand.vmem [shape: f32[1,32], index: 4, kind: input, shape index: {}]   ;;  %s1015_s5 = inlined_call_operand.hbm [shape: f32[16,32], index: 5, kind: output, shape index: {}]  }
   0x1   :  { %12 = vsyncpa [#allocation3 + $0x1], 0  ;;  %s782_s18 = smov 0   ;;  %s784_s19 = smov 0  }
   0x2   :  { %s786_s20 = smov 0   ;;  %s788_s21 = smov 0  }
   0x3 LB: > { %s803_s22 = sadd.s32 4294967295, %s748_s21   ;;  %s551_s23 = sadd.s32 4294967294, %s748_s21   ;;  %s748_s21 = sphi %s788_s21, %s1021_s21   ;;  %s744_s20 = sphi %s786_s20, %s1020_s20   ;;  %s740_s19 = sphi %s784_s19, %s1019_s19   ;;  %s736_s18 = sphi %s782_s18, %s1018_s18  }
   0x4   : > { %s807_s24 = sadd.s32 1, %s748_s21   ;;  %s135_s25 = sadd.s32 1, %s744_s20 }
   0x5   : > { %s132_s26 = ssub.s32 %s748_s21, %s807_s24  ;;  %p145_p0 = scmp.ne.s32.totalorder %s744_s20, %s740_s19 }
   0x6   : > { %p133_p1 = scmp.eq.s32.totalorder %s132_s26, 0  ;;  %p146_p2 = scmp.eq.s32.totalorder %s803_s22, 1 }
   0x7   : > { %p151_p3 = scmp.ne.s32.totalorder %s740_s19, %s736_s18  ;;  %p152_p4 = scmp.eq.s32.totalorder %s551_s23, 1 }
   0x8   : > { %s818_s27 = scalar_select %p133_p1, %s744_s20, %s135_s25  }
   0x9   : > { %p820_p5 = por %p146_p2, %p145_p0  ;;  %p824_p6 = por %p152_p4, %p151_p3 }
   0xa   : > { %p554_p7 = scmp.ge.s32.totalorder %s748_s21, 1  ;;  %p189_p8 = scmp.lt.s32.totalorder %s748_s21, 3 }
   0xc   : > { %p190_p9 = pnand %p554_p7, %p189_p8 }
   0xd   : > { %v222_v0 = vld [vmem:[%s1011_s1 + $0x8] sm:$0xff] (!%p190_p9)  ;;  %v224_v1 = vld [vmem:[%s1011_s1 + $0x18] sm:$0xff] (!%p190_p9)  ;;  %v221_v2 = vld [vmem:[%s1011_s1] sm:$0xff] (!%p190_p9)  ;;  %p216_p10 = scmp.lt.s32.totalorder (!%p190_p9), %s803_s22, 1  ;;  %v750_v7 = vmov (!%p190_p9), 0.0   ;;  %vm241_vm0 = vcmask (!%p190_p9), 261120   ;;  %v231_v62 = vlaneseq (!%p190_p9) }
   0xe   : > { %193 = sbr.rel (%p190_p9) target bundleno = 521 (0x209), region = 40  ;;  %v598_v3 = vpack.c.bf16 (!%p190_p9), %v224_v1, %v222_v0  ;;  %v223_v4 = vld [vmem:[%s1011_s1 + $0x10] sm:$0xff] (!%p190_p9)  ;;  %v226_v5 = vld [vmem:[%s1011_s1 + $0x28] sm:$0xff] (!%p190_p9)  ;;  %v228_v6 = vld [vmem:[%s1011_s1 + $0x38] sm:$0xff] (!%p190_p9)  ;;  %309 = vmatprep.mubr.f32.mxu0 (!%p190_p9), %v750_v7  ;;  %s213_s12 = sand.u32 (!%p190_p9), 1, %s740_s19  }
   0xf   : > { %v600_v8 = vpack.c.bf16 (!%p190_p9), %v223_v4, %v221_v2  ;;  %v602_v9 = vpack.c.bf16 (!%p190_p9), %v228_v6, %v226_v5  ;;  %v225_v10 = vld [vmem:[%s1011_s1 + $0x20] sm:$0xff] (!%p190_p9)  ;;  %v227_v11 = vld [vmem:[%s1011_s1 + $0x30] sm:$0xff] (!%p190_p9)  ;;  %v385_v15 = vld [vmem:[%s1013_s3 + $0x88] sm:$0xff] (!%p190_p9)  ;;  %v232_v63 = vshrl.u32 (!%p190_p9), %v231_v62, 7  ;;  %s555_s13 = sshll.u32 (!%p190_p9), %s213_s12, 3  ;;  %s560_s16 = sshll.u32 (!%p190_p9), %s803_s22, 7 }
  0x10   : > { %599 = vmatprep.subr.bf16.mxu0 (!%p190_p9), %v598_v3  ;;  %v604_v12 = vpack.c.bf16 (!%p190_p9), %v227_v11, %v225_v10  ;;  %v384_v14 = vld [vmem:[%s1013_s3 + $0x80] sm:$0xff] (!%p190_p9)  ;;  %v369_v18 = vld [vmem:[%s1013_s3 + $0x8] sm:$0xff] (!%p190_p9)  ;;  %v386_v19 = vld [vmem:[%s1013_s3 + $0x90] sm:$0xff] (!%p190_p9)  ;;  %s215_s17 = scalar_lea.vmem (!%p190_p9), [#allocation2], %s555_s13 }
  0x11   : > { %601 = vmatpush1.bf16.msra.mxu0 (!%p190_p9), %v600_v8  ;;  %v368_v16 = vld [vmem:[%s1013_s3] sm:$0xff] (!%p190_p9)  ;;  %v606_v17 = vpack.c.bf16 (!%p190_p9), %v385_v15, %v384_v14  ;;  %v387_v20 = vld [vmem:[%s1013_s3 + $0x98] sm:$0xff] (!%p190_p9)  ;;  %v370_v23 = vld [vmem:[%s1013_s3 + $0x10] sm:$0xff] (!%p190_p9)  ;;  %v233_v0 = vsub.s32 (!%p190_p9), 0, %v232_v63  ;;  %v237_v2 = vsub.s32 (!%p190_p9), 1, %v232_v63  ;;  %s492_s23 = sshll.u32 (!%p190_p9), %s215_s17, 4  ;;  %s969_s23 = int_to_ptr.vmem [resolvable:$true] %s492_s23 }
  0x12   : > { %603 = vmatprep.subr.bf16.mxu0 (!%p190_p9), %v602_v9  ;;  %v608_v21 = vpack.c.bf16 (!%p190_p9), %v369_v18, %v368_v16  ;;  %v610_v22 = vpack.c.bf16 (!%p190_p9), %v387_v20, %v386_v19  ;;  %v371_v24 = vld [vmem:[%s1013_s3 + $0x18] sm:$0xff] (!%p190_p9)  ;;  %v388_v25 = vld [vmem:[%s1013_s3 + $0xa0] sm:$0xff] (!%p190_p9)  ;;  %v389_v26 = vld [vmem:[%s1013_s3 + $0xa8] sm:$0xff] (!%p190_p9)  ;;  %s686_s7 = scalar_lea.vmem (!%p190_p9), %s969_s23, 128 }
  0x13   : > { %607 = vmatprep.subr.bf16.mxu1 (!%p190_p9), %v606_v17  ;;  %v612_v27 = vpack.c.bf16 (!%p190_p9), %v371_v24, %v370_v23  ;;  %v614_v28 = vpack.c.bf16 (!%p190_p9), %v389_v26, %v388_v25  ;;  %v372_v29 = vld [vmem:[%s1013_s3 + $0x20] sm:$0xff] (!%p190_p9)  ;;  %v373_v30 = vld [vmem:[%s1013_s3 + $0x28] sm:$0xff] (!%p190_p9)  ;;  %v390_v31 = vld [vmem:[%s1013_s3 + $0xb0] sm:$0xff] (!%p190_p9)  ;;  %p687_p11 = scmp.ne.s32.totalorder (!%p190_p9), %s969_s23, %s686_s7 }
  0x14   : > { %609 = vmatpush3.bf16.msra.mxu1 (!%p190_p9), %v608_v21  ;;  %v391_v32 = vld [vmem:[%s1013_s3 + $0xb8] sm:$0xff] (!%p190_p9)  ;;  %v616_v33 = vpack.c.bf16 (!%p190_p9), %v373_v30, %v372_v29  ;;  %v374_v35 = vld [vmem:[%s1013_s3 + $0x30] sm:$0xff] (!%p190_p9)  ;;  %v392_v37 = vld [vmem:[%s1013_s3 + $0xc0] sm:$0xff] (!%p190_p9) }
  0x15   : > { %s217_s30 = scalar_select %p216_p10, %s803_s22, 1  ;;  %605 = vmatpush1.bf16.msra.mxu0 %v604_v12  ;;  %611 = vmatprep.subr.bf16.mxu1 %v610_v22  ;;  %v618_v34 = vpack.c.bf16 %v391_v32, %v390_v31  ;;  %v375_v36 = vld [vmem:[%s1013_s3 + $0x38] sm:$0xff]  ;;  %v393_v38 = vld [vmem:[%s1013_s3 + $0xc8] sm:$0xff]  ;;  %v376_v41 = vld [vmem:[%s1013_s3 + $0x40] sm:$0xff] }
  0x16   : > { %v620_v39 = vpack.c.bf16 %v375_v36, %v374_v35  ;;  %v622_v40 = vpack.c.bf16 %v393_v38, %v392_v37  ;;  %v377_v42 = vld [vmem:[%s1013_s3 + $0x48] sm:$0xff]  ;;  %v394_v43 = vld [vmem:[%s1013_s3 + $0xd0] sm:$0xff]  ;;  %v395_v44 = vld [vmem:[%s1013_s3 + $0xd8] sm:$0xff]  ;;  %p688_p12 = pnand %p687_p11, %p820_p5  ;;  %s751_s22 = smov [#allocation2]  }
  0x17   : > { %s556_s6 = sshll.u32 %s217_s30, 3  ;;  %v624_v45 = vpack.c.bf16 %v377_v42, %v376_v41  ;;  %v626_v46 = vpack.c.bf16 %v395_v44, %v394_v43  ;;  %v378_v47 = vld [vmem:[%s1013_s3 + $0x50] sm:$0xff]  ;;  %v379_v48 = vld [vmem:[%s1013_s3 + $0x58] sm:$0xff]  ;;  %v396_v49 = vld [vmem:[%s1013_s3 + $0xe0] sm:$0xff]  ;;  %s967_s30 = scalar_lea.hbm %s1015_s5, %s560_s16 }
  0x18   : > { %s219_s9 = scalar_lea.vmem %s1010_s0, %s556_s6  ;;  %613 = vmatpush3.bf16.msra.mxu1 %v612_v27  ;;  %v397_v50 = vld [vmem:[%s1013_s3 + $0xe8] sm:$0xff]  ;;  %v628_v51 = vpack.c.bf16 %v379_v48, %v378_v47  ;;  %v380_v53 = vld [vmem:[%s1013_s3 + $0x60] sm:$0xff]  ;;  %v398_v55 = vld [vmem:[%s1013_s3 + $0xf0] sm:$0xff]  ;;  %s479_s6 = scalar_lea.sflag [#allocation3], %s213_s12 }
  0x19   : > { %v220_v13 = vld [vmem:[%s219_s9] sm:$0xff]  ;;  %615 = vmatprep.subr.bf16.mxu1 %v614_v28  ;;  %v630_v52 = vpack.c.bf16 %v397_v50, %v396_v49  ;;  %v381_v54 = vld [vmem:[%s1013_s3 + $0x68] sm:$0xff]  ;;  %v399_v56 = vld [vmem:[%s1013_s3 + $0xf8] sm:$0xff]  ;;  %p689_p13 = pneg %p688_p12  ;;  %s690_s8 = sshll.u32 %s751_s22, 4  ;;  %s691_s8 = int_to_ptr.vmem [resolvable:$false] %s690_s8 }
  0x1a   : > { %557 = vmatmul.mubr.msk.f32.vlgmr.msra.gmra.mrb[0].mxu0 %vm241_vm0, %v220_v13  ;;  %v632_v57 = vpack.c.bf16 %v381_v54, %v380_v53  ;;  %v634_v58 = vpack.c.bf16 %v399_v56, %v398_v55  ;;  %v382_v59 = vld [vmem:[%s1013_s3 + $0x70] sm:$0xff]  ;;  %v383_v60 = vld [vmem:[%s1013_s3 + $0x78] sm:$0xff]  ;;  %v229_v1 = vld [vmem:[%s1012_s2] sm:$0x3]  ;;  %s692_s9 = scalar_lea.vmem %s691_s8, 256  ;;  %p693_p0 = scmp.lt.s32.totalorder %s969_s23, %s691_s8 }
  0x1b   : > { %v636_v61 = vpack.c.bf16 %v383_v60, %v382_v59  ;;  %v234_v3 = vrot.slane %v229_v1, %v233_v0  ;;  %v238_v4 = vrot.slane %v229_v1, %v237_v2  ;;  %v558_v60 = vld [vmem:[%s1014_s4] ss:$0 sm:$0xff]  ;;  %p694_p1 = scmp.lt.s32.totalorder %s692_s9, %s686_s7 }
  0x1c   : > { %617 = vmatpush3.bf16.msra.mxu1 %v616_v33 }
  0x1d   : > { %619 = vmatprep.subr.bf16.mxu1 %v618_v34  ;;  %p695_p2 = por %p694_p1, %p693_p0 }
  0x1f   : > { %p696_p3 = pnand %p695_p2, %p689_p13 }
  0x20   : > { %621 = vmatpush3.bf16.msra.mxu1 %v620_v39 }
  0x21   : > { %623 = vmatprep.subr.bf16.mxu1 %v622_v40 }
  0x24   : > { %625 = vmatpush3.bf16.msra.mxu1 %v624_v45 }
  0x25   : > { %627 = vmatprep.subr.bf16.mxu1 %v626_v46 }
  0x28   : > { %629 = vmatpush3.bf16.msra.mxu1 %v628_v51 }
  0x29   : > { %631 = vmatprep.subr.bf16.mxu1 %v630_v52 }
  0x2c   : > { %633 = vmatpush3.bf16.msra.mxu1 %v632_v57 }
  0x2d   : > { %635 = vmatprep.subr.bf16.mxu1 %v634_v58 }
  0x30   : > { %637 = vmatpush3.bf16.msra.mxu1 %v636_v61 }
  0xed   : > { %v311_v5 = vpop.f32.mrb[0].mxu0 }
  0xee   : > { %v312_v6 = vadd.f32 %v311_v5, %v234_v3  ;;  %v313_v7 = vpop.f32.mrb[1].mxu0 }
  0xef   : > { %v314_v8 = vadd.f32 %v313_v7, %v238_v4 }
  0xf0   : > { %v318_v9 = vmul.f32 0.70710677, %v312_v6  ;;  %v316_v56 = vmul.f32 0.5, %v312_v6 }
  0xf1   : > { %v319_v10 = vmul.f32 0.70710677, %v314_v8  ;;  %v317_v54 = vmul.f32 0.5, %v314_v8 }
  0xf2   : > { %v320_v11 = vand.u32 2147483647, %v318_v9  ;;  %vm358_vm1 = vcmp.ge.f32.partialorder %v318_v9, 0.0 }
  0xf3   : > { %v321_v12 = vand.u32 2147483647, %v319_v10  ;;  %vm359_vm2 = vcmp.ge.f32.partialorder %v319_v10, 0.0 }
  0xf4   : > { %v322_v13 = vmul.f32 0.3275911, %v320_v11  ;;  %v346_v17 = vsub.f32 0.0, %v320_v11 }
  0xf5   : > { %v323_v14 = vmul.f32 0.3275911, %v321_v12  ;;  %v347_v18 = vsub.f32 0.0, %v321_v12 }
  0xf6   : > { %v324_v15 = vadd.f32 1.0, %v322_v13  ;;  %v348_v20 = vmul.f32 %v346_v17, %v320_v11 }
  0xf7   : > { %v325_v16 = vadd.f32 1.0, %v323_v14  ;;  %v349_v22 = vmul.f32 %v347_v18, %v321_v12 }
  0xf8   : > { %678 = vrcp.f32 %v324_v15  ;;  %v350_v26 = vmul.f32 1.442695, %v348_v20 }
  0xf9   : > { %680 = vrcp.f32 %v325_v16  ;;  %v352_v28 = vmul.f32 1.442695, %v349_v22 }
  0xfa   : > { %682 = vpow2.f32 %v350_v26 }
  0xfb   : > { %684 = vpow2.f32 %v352_v28 }
 0x102   : > { %v679_v19 = vpop.eup %678 }
 0x103   : > { %v681_v21 = vpop.eup %680  ;;  %v328_v23 = vmul.f32 1.0614054, %v679_v19 }
 0x104   : > { %v329_v24 = vmul.f32 1.0614054, %v681_v21  ;;  %v683_v42 = vpop.eup %682 }
 0x105   : > { %v330_v25 = vadd.f32 -1.4531521, %v328_v23  ;;  %v685_v44 = vpop.eup %684 }
 0x106   : > { %v331_v27 = vadd.f32 -1.4531521, %v329_v24 }
 0x107   : > { %v332_v29 = vmul.f32 %v679_v19, %v330_v25 }
 0x108   : > { %v333_v30 = vmul.f32 %v681_v21, %v331_v27 }
 0x109   : > { %v334_v31 = vadd.f32 1.4214138, %v332_v29 }
 0x10a   : > { %v335_v32 = vadd.f32 1.4214138, %v333_v30 }
 0x10b   : > { %v336_v33 = vmul.f32 %v679_v19, %v334_v31 }
 0x10c   : > { %v337_v34 = vmul.f32 %v681_v21, %v335_v32 }
 0x10d   : > { %v338_v35 = vadd.f32 -0.28449672, %v336_v33 }
 0x10e   : > { %v339_v36 = vadd.f32 -0.28449672, %v337_v34 }
 0x10f   : > { %v340_v37 = vmul.f32 %v679_v19, %v338_v35 }
 0x110   : > { %v341_v38 = vmul.f32 %v681_v21, %v339_v36 }
 0x111   : > { %v342_v39 = vadd.f32 0.2548296, %v340_v37 }
 0x112   : > { %v343_v40 = vadd.f32 0.2548296, %v341_v38 }
 0x113   : > { %v344_v41 = vmul.f32 %v679_v19, %v342_v39 }
 0x114   : > { %v345_v43 = vmul.f32 %v681_v21, %v343_v40 }
 0x115   : > { %v354_v45 = vmul.f32 %v683_v42, %v344_v41 }
 0x116   : > { %v355_v46 = vmul.f32 %v685_v44, %v345_v43 }
 0x117   : > { %v356_v47 = vsub.f32 1.0, %v354_v45 }
 0x118   : > { %v357_v48 = vsub.f32 1.0, %v355_v46 }
 0x119   : > { %v360_v49 = vsub.f32 0.0, %v356_v47 }
 0x11a   : > { %v361_v50 = vsub.f32 0.0, %v357_v48 }
 0x11b   : > { %v362_v51 = vsel %vm358_vm1, %v356_v47, %v360_v49 }
 0x11c   : > { %v363_v52 = vsel %vm359_vm2, %v357_v48, %v361_v50  ;;  %v364_v53 = vadd.f32 1.0, %v362_v51 }
 0x11d   : > { %v365_v55 = vadd.f32 1.0, %v363_v52 }
 0x11e   : > { %v366_v58 = vmul.f32 %v364_v53, %v316_v56 }
 0x11f   : > { %v367_v57 = vmul.f32 %v365_v55, %v317_v54 }
 0x121   : > { %471 = vmatprep.mubr.f32.mxu1 %v367_v57 }
 0x122   : > { %472 = vmatmul.mubr.f32.vlgmr.msra.gmra.mrb[0].mxu1 %v366_v58 }
 0x1f5   : > { %v595_v59 = vpop.f32.mrb[0].mxu1 }
 0x1f6   : > { %v596_v61 = vpop.f32.mrb[1].mxu1 }
 0x1f7   : > { %v597_v62 = vadd.f32 %v596_v61, %v595_v59 }
 0x1f9   : > { %v474_v63 = vadd.f32 %v597_v62, %v558_v60 }
 0x1fb   : > { %477 = vst.msk [vmem:[%s215_s17] sm:$0xff] %vm241_vm0, %v474_v63 }
 0x1fc   : > { %699 = shalt.err (!%p696_p3)
}
 0x1fd   : > { %s700_s10 = scalar_lea.hbm %s967_s30, 128  ;;  %s704_s13 = scalar_lea.hbm %s1015_s5, 256 }
 0x1fe   : > { %p701_p4 = scmp.ne.s32.totalorder %s967_s30, %s700_s10  ;;  %p705_p9 = scmp.lt.u32.totalorder %s967_s30, %s1015_s5 }
 0x1ff   : > { %p706_p10 = scmp.lt.u32.totalorder %s704_s13, %s700_s10  ;;  %p708_p12 = scmp.lt.u32.totalorder %s700_s10, %s967_s30 }
 0x200   : > { %p702_p7 = pnand %p701_p4, %p820_p5 }
 0x201   : > { %p707_p11 = por %p706_p10, %p705_p9 }
 0x202   : > { %p703_p8 = pneg %p702_p7 }
 0x203   : > { %p709_p13 = por %p708_p12, %p707_p11 }
 0x205   : > { %p710_p0 = pnand %p709_p13, %p703_p8 }
 0x207   : > { %713 = shalt.err (!%p710_p0)
}
 0x208   : > { %638 = dma.vmem_to_hbm [thread:$0]  (%p820_p5), %s969_s23, 128, %s967_s30, %s479_s6  }
 0x209 PF: > { %p644_p1 = scmp.ge.s32.totalorder %s748_s21, 2  ;;  %s504_s16 = sand.u32 1, %s736_s18  }
 0x20a   : > { %s505_s17 = scalar_lea.sflag [#allocation3], %s504_s16 }
 0x20b   : > { %p641_p2 = pnand %p644_p1, %p824_p6 }
 0x20d   : > { %731 = dma.done.wait (!%p641_p2), %s505_s17, 128  }
 0x20e   : > { %733 = vsyncadd (!%p641_p2), %s505_s17, 4294967168  ;;  %p15_p3 = scmp.ge.s32.totalorder %s807_s24, 4   ;;  %s1018_s18 = smov %s740_s19 }
 0x20f   : > { %s1019_s19 = smov %s744_s20  ;;  %s1020_s20 = smov %s818_s27 }
 0x210   : > { %s1021_s21 = smov %s807_s24  ;;  %17 = sbr.rel (!%p15_p3) target bundleno = 3 (0x3), region = 75 }
 0x217   :  { %510 = vsyncpa [#allocation3], 1 }
 0x218   :  { %512 = vsyncpa [#allocation3 + $0x1], 1 }

</bundles_post_ra>
